<compile_context>
chip_gen: v7x
topology: tpu7x:2x2x1
jax: 0.10.0
libtpu: 0.0.40
codegen_flags: <defaults>
</compile_context>

<pallas_src>
import jax
import jax.numpy as jnp
from jax.experimental import pallas as pl
from jax.experimental.pallas import tpu as pltpu

# ----------------------------- config ("self.c") -----------------------------
NUM_OBJ = 3                       # c.num_obj  (the "_3_only" matcher assumes 3)
IMG_C, IMG_W, IMG_H = 1, 16, 16   # c, w, h
HIDDEN = 32                       # encoder hidden size
MIN_OBJ_SCALE, MAX_OBJ_SCALE = 0.1, 0.8   # constrain_zp scale bounds (scales are
                                          # dead in this forward and skipped)
DUP_EPS2 = 1e-4                   # squared-position threshold used by fix_supair

PERMS = ((0, 1, 2), (0, 2, 1), (1, 0, 2), (1, 2, 0), (2, 0, 1), (2, 1, 0))


# ----------------------------- encoder kernel --------------------------------
def _encoder_kernel(x_ref, w1_ref, b1_ref, wi_ref, wr_ref, br_ref,
                    wo_ref, bo_ref, out_ref):
    """RnnStates: flattened-frame MLP features + RNN emitting one object/step.

    x_ref:   (tb, D)            flattened frames
    out_ref: (tb, NUM_OBJ * 4)  raw (unconstrained) per-object [sx, sy, x, y]
    """
    x = x_ref[...]
    feat = jnp.maximum(
        jnp.dot(x, w1_ref[...], preferred_element_type=jnp.float32) + b1_ref[...],
        0.0)
    # h-invariant part of the recurrence, hoisted out of the object loop.
    fi = jnp.dot(feat, wi_ref[...], preferred_element_type=jnp.float32) + br_ref[...]
    wr = wr_ref[...]
    wo = wo_ref[...]
    bo = bo_ref[...]

    # object 0: previous hidden state is zero -> skip the h@wr matmul entirely.
    h = jnp.tanh(fi)
    outs = [jnp.dot(h, wo, preferred_element_type=jnp.float32) + bo]
    for _ in range(1, NUM_OBJ):   # static unroll: AIR/SuPAIR-style RNN over objects
        h = jnp.tanh(fi + jnp.dot(h, wr, preferred_element_type=jnp.float32))
        outs.append(jnp.dot(h, wo, preferred_element_type=jnp.float32) + bo)

    # Single lane-dense store of the full (tb, 12) block.
    out_ref[...] = jnp.concatenate(outs, axis=-1)


def _largest_divisor_leq(b, target):
    t = min(b, target)
    while b % t:
        t -= 1
    return t


def rnn_states(x_flat, params, *, max_tb=256):
    """x_flat: (B, D) -> raw z_sup (B, NUM_OBJ * 4)."""
    B, D = x_flat.shape
    # Large batch tile (fills the MXU M dimension, amortizes per-step overhead);
    # when B > max_tb the grid stays >= 2 parallel blocks for v7x megacore.
    tb = _largest_divisor_leq(B, max_tb)
    return pl.pallas_call(
        _encoder_kernel,
        out_shape=jax.ShapeDtypeStruct((B, NUM_OBJ * 4), jnp.float32),
        grid=(B // tb,),
        in_specs=[
            pl.BlockSpec((tb, D), lambda i: (i, 0)),
            pl.BlockSpec(params["w1"].shape, lambda i: (0, 0)),
            pl.BlockSpec(params["b1"].shape, lambda i: (0, 0)),
            pl.BlockSpec(params["wi"].shape, lambda i: (0, 0)),
            pl.BlockSpec(params["wr"].shape, lambda i: (0, 0)),
            pl.BlockSpec(params["br"].shape, lambda i: (0, 0)),
            pl.BlockSpec(params["wo"].shape, lambda i: (0, 0)),
            pl.BlockSpec(params["bo"].shape, lambda i: (0, 0)),
        ],
        out_specs=pl.BlockSpec((tb, NUM_OBJ * 4), lambda i: (i, 0)),
        compiler_params=pltpu.CompilerParams(dimension_semantics=("parallel",)),
    )(x_flat, params["w1"], params["b1"], params["wi"], params["wr"],
      params["br"], params["wo"], params["bo"])


# --------------------------- state-processing kernel --------------------------
def _state_kernel(z_ref, o_ref):
    """constrain_zp(pos) + match_objects + fix_supair + v_from_state + rescale.

    z_ref: (T, 2*o, n)   raw encoder position channels (2*i + {x,y}), batch on lanes
    o_ref: (T-1, 4*o, n) final [x, y, vx, vy] per object (channel 4*i + k)
    """
    T = z_ref.shape[0]

    def split_xy(z6):
        # per-object (1, n) lane vectors: x_i = row 2*i, y_i = row 2*i + 1
        return ([z6[2 * i:2 * i + 1, :] for i in range(NUM_OBJ)],
                [z6[2 * i + 1:2 * i + 2, :] for i in range(NUM_OBJ)])

    # ---- t = 0: constrain_zp positions (tanh in (-1, 1)); seed the carries ----
    p0 = jnp.tanh(z_ref[0])
    pmx, pmy = split_xy(p0)            # previous *matched* positions
    pfx, pfy = list(pmx), list(pmy)    # previous *fixed* positions

    # Fused, statically-unrolled time recurrence (T is small and static).
    for t in range(1, T):
        cur = jnp.tanh(z_ref[t])
        cx, cy = split_xy(cur)

        # ---- _3_only_match_objects via 3x3 pairwise squared-distance matrix ----
        # d[i][j] = || cur_i - prev_matched_j ||^2, each a (1, n) lane vector.
        d = [[(cx[i] - pmx[j]) ** 2 + (cy[i] - pmy[j]) ** 2
              for j in range(NUM_OBJ)] for i in range(NUM_OBJ)]
        best = None
        sx = [None] * NUM_OBJ
        sy = [None] * NUM_OBJ
        for p in PERMS:   # earliest permutation wins ties (strict '<')
            cost = d[p[0]][0] + d[p[1]][1] + d[p[2]][2]
            if best is None:
                best = cost
                for j in range(NUM_OBJ):
                    sx[j], sy[j] = cx[p[j]], cy[p[j]]
            else:
                take = cost < best
                for j in range(NUM_OBJ):
                    sx[j] = jnp.where(take, cx[p[j]], sx[j])
                    sy[j] = jnp.where(take, cy[p[j]], sy[j])
                best = jnp.minimum(cost, best)

        # ---- fix_supair (reconstruction): if two matched detections collapse ----
        # onto the same position, replace the higher-indexed one by its previous
        # fixed state.
        # TODO(synk): exact STOVE fix_supair heuristic unavailable; stand-in above.
        fx = [sx[0]]
        fy = [sy[0]]
        for i in range(1, NUM_OBJ):
            dup = None
            for j in range(i):
                c = (sx[i] - sx[j]) ** 2 + (sy[i] - sy[j]) ** 2 < DUP_EPS2
                dup = c if dup is None else (dup | c)
            fx.append(jnp.where(dup, pfx[i], sx[i]))
            fy.append(jnp.where(dup, pfy[i], sy[i]))

        # ---- v_from_state + [:, 1:, :, 2:] slice + the two rescaling concats ----
        rows = []
        for i in range(NUM_OBJ):
            rows.append((fx[i] + 1.0) / 2.0 * 10.0 / 5.0)          # x
            rows.append((fy[i] + 1.0) / 2.0 * 10.0 / 5.0)          # y
            rows.append((fx[i] - pfx[i]) / 2.0 * 10.0 * 2.0)       # vx
            rows.append((fy[i] - pfy[i]) / 2.0 * 10.0 * 2.0)       # vy
        o_ref[t - 1] = jnp.concatenate(rows, axis=0)               # (4*o, n) store

        # carries for the next step
        pmx, pmy = sx, sy
        pfx, pfy = fx, fy


def _batch_lane_block(n):
    # v7x has 2 TensorCores; the per-batch-element recurrence is independent, so
    # shard the lane (batch) axis when the block stays 128-aligned.
    return n // 2 if (n % 256 == 0) else n


def supervisor_states(z_pos_tm):
    """z_pos_tm: (T, 2*o, n) raw encoder position channels -> (T-1, 4*o, n)."""
    T, C, n = z_pos_tm.shape
    nb = _batch_lane_block(n)
    return pl.pallas_call(
        _state_kernel,
        out_shape=jax.ShapeDtypeStruct((T - 1, NUM_OBJ * 4, n), jnp.float32),
        grid=(n // nb,),
        in_specs=[pl.BlockSpec((T, C, nb), lambda b: (0, 0, b))],
        out_specs=pl.BlockSpec((T - 1, NUM_OBJ * 4, nb), lambda b: (0, 0, b)),
        compiler_params=pltpu.CompilerParams(dimension_semantics=("parallel",)),
    )(z_pos_tm)


# ----------------------------- forward (wrapper glue) -------------------------
def supervisor_forward(x, params):
    """x: (n, T, c, w, h) float32 -> (n, T-1, num_obj, 4)."""
    n, T = x.shape[0], x.shape[1]
    x_flat = x.reshape(n * T, -1)                   # flatten(end_dim=1) + per-frame flatten
    z_sup = rnn_states(x_flat, params)              # (n*T, o*4) raw

    # constrain_zp: only the tanh position channels are consumed downstream; the
    # sigmoid scale channels are dead for this forward and skipped entirely.
    z_pos = z_sup.reshape(n, T, NUM_OBJ, 4)[..., 2:4]            # (n, T, o, 2) raw
    # Tiny (n*T*2*o floats) relayout to time-major / batch-on-lanes in XLA.
    z_pos_tm = z_pos.reshape(n, T, NUM_OBJ * 2).transpose(1, 2, 0)  # (T, 2*o, n)

    out_tm = supervisor_states(z_pos_tm)            # (T-1, 4*o, n)
    return out_tm.transpose(2, 0, 1).reshape(n, T - 1, NUM_OBJ, 4)


def init_params(key, D=IMG_C * IMG_W * IMG_H, H=HIDDEN):
    ks = jax.random.split(key, 4)
    s = 0.1
    return dict(
        w1=s * jax.random.normal(ks[0], (D, H), jnp.float32),
        b1=jnp.zeros((1, H), jnp.float32),
        wi=s * jax.random.normal(ks[1], (H, H), jnp.float32),
        wr=s * jax.random.normal(ks[2], (H, H), jnp.float32),
        br=jnp.zeros((1, H), jnp.float32),
        wo=s * jax.random.normal(ks[3], (H, 4), jnp.float32),
        bo=jnp.zeros((1, 4), jnp.float32),
    )


if __name__ == "__main__":
    key = jax.random.PRNGKey(0)
    kx, kp = jax.random.split(key)
    n, T = 2, 8
    x = jax.random.normal(kx, (n, T, IMG_C, IMG_W, IMG_H), jnp.float32)
    params = init_params(kp)

    out = supervisor_forward(x, params)
    out = jax.block_until_ready(out)

    assert out.shape == (n, T - 1, NUM_OBJ, 4), out.shape
    assert bool(jnp.all(jnp.isfinite(out)))
    print("KERNEL_OK")
</pallas_src>

<mosaic_0001>
module attributes {stable_mosaic.version = 11 : i64} {
  func.func @_encoder_kernel(%arg0: i32, %arg1: memref<16x256xf32, #tpu.memory_space<vmem>>, %arg2: memref<256x32xf32, #tpu.memory_space<vmem>>, %arg3: memref<1x32xf32, #tpu.memory_space<vmem>>, %arg4: memref<32x32xf32, #tpu.memory_space<vmem>>, %arg5: memref<32x32xf32, #tpu.memory_space<vmem>>, %arg6: memref<1x32xf32, #tpu.memory_space<vmem>>, %arg7: memref<32x4xf32, #tpu.memory_space<vmem>>, %arg8: memref<1x4xf32, #tpu.memory_space<vmem>>, %arg9: memref<16x12xf32, #tpu.memory_space<vmem>>) attributes {dimension_semantics = [#tpu.dimension_semantics<parallel>], iteration_bounds = array<i64: 1>, scalar_prefetch = 0 : i64, scratch_operands = 0 : i64, tpu.core_type = #tpu.core_type<tc>, window_params = [{transform_indices = @transform_0, window_bounds = array<i64: 16, 256>}, {pipeline_mode = #tpu.pipeline_mode<synchronous>, transform_indices = @transform_1, window_bounds = array<i64: 256, 32>}, {pipeline_mode = #tpu.pipeline_mode<synchronous>, transform_indices = @transform_2, window_bounds = array<i64: 1, 32>}, {pipeline_mode = #tpu.pipeline_mode<synchronous>, transform_indices = @transform_3, window_bounds = array<i64: 32, 32>}, {pipeline_mode = #tpu.pipeline_mode<synchronous>, transform_indices = @transform_4, window_bounds = array<i64: 32, 32>}, {pipeline_mode = #tpu.pipeline_mode<synchronous>, transform_indices = @transform_5, window_bounds = array<i64: 1, 32>}, {pipeline_mode = #tpu.pipeline_mode<synchronous>, transform_indices = @transform_6, window_bounds = array<i64: 32, 4>}, {pipeline_mode = #tpu.pipeline_mode<synchronous>, transform_indices = @transform_7, window_bounds = array<i64: 1, 4>}, {transform_indices = @transform_8, window_bounds = array<i64: 16, 12>}]} {
    %c0 = arith.constant 0 : index
    %c0_0 = arith.constant 0 : index
    %0 = vector.load %arg1[%c0, %c0_0] : memref<16x256xf32, #tpu.memory_space<vmem>>, vector<16x256xf32>
    %c0_1 = arith.constant 0 : index
    %c0_2 = arith.constant 0 : index
    %1 = vector.load %arg2[%c0_1, %c0_2] : memref<256x32xf32, #tpu.memory_space<vmem>>, vector<256x32xf32>
    %cst = arith.constant dense<0.000000e+00> : vector<16x32xf32>
    %2 = tpu.matmul %0, %1, %cst {dimension_numbers = #tpu.dot_dimension_numbers<[1], [0], [0], [1], [0, 0, 1, 1], [], []>} : vector<16x256xf32>, vector<256x32xf32>, vector<16x32xf32> -> vector<16x32xf32>
    %c0_3 = arith.constant 0 : index
    %c0_4 = arith.constant 0 : index
    %3 = vector.load %arg3[%c0_3, %c0_4] : memref<1x32xf32, #tpu.memory_space<vmem>>, vector<1x32xf32>
    %4 = vector.broadcast %3 : vector<1x32xf32> to vector<16x32xf32>
    %5 = arith.addf %2, %4 : vector<16x32xf32>
    %cst_5 = arith.constant 0.000000e+00 : f32
    %6 = vector.broadcast %cst_5 : f32 to vector<16x32xf32>
    %7 = arith.maximumf %5, %6 : vector<16x32xf32>
    %c0_6 = arith.constant 0 : index
    %c0_7 = arith.constant 0 : index
    %8 = vector.load %arg4[%c0_6, %c0_7] : memref<32x32xf32, #tpu.memory_space<vmem>>, vector<32x32xf32>
    %cst_8 = arith.constant dense<0.000000e+00> : vector<16x32xf32>
    %9 = tpu.matmul %7, %8, %cst_8 {dimension_numbers = #tpu.dot_dimension_numbers<[1], [0], [0], [1], [0, 0, 1, 1], [], []>} : vector<16x32xf32>, vector<32x32xf32>, vector<16x32xf32> -> vector<16x32xf32>
    %c0_9 = arith.constant 0 : index
    %c0_10 = arith.constant 0 : index
    %10 = vector.load %arg6[%c0_9, %c0_10] : memref<1x32xf32, #tpu.memory_space<vmem>>, vector<1x32xf32>
    %11 = vector.broadcast %10 : vector<1x32xf32> to vector<16x32xf32>
    %12 = arith.addf %9, %11 : vector<16x32xf32>
    %c0_11 = arith.constant 0 : index
    %c0_12 = arith.constant 0 : index
    %13 = vector.load %arg5[%c0_11, %c0_12] : memref<32x32xf32, #tpu.memory_space<vmem>>, vector<32x32xf32>
    %c0_13 = arith.constant 0 : index
    %c0_14 = arith.constant 0 : index
    %14 = vector.load %arg7[%c0_13, %c0_14] : memref<32x4xf32, #tpu.memory_space<vmem>>, vector<32x4xf32>
    %c0_15 = arith.constant 0 : index
    %c0_16 = arith.constant 0 : index
    %15 = vector.load %arg8[%c0_15, %c0_16] : memref<1x4xf32, #tpu.memory_space<vmem>>, vector<1x4xf32>
    %16 = math.tanh %12 : vector<16x32xf32>
    %cst_17 = arith.constant dense<0.000000e+00> : vector<16x4xf32>
    %17 = tpu.matmul %16, %14, %cst_17 {dimension_numbers = #tpu.dot_dimension_numbers<[1], [0], [0], [1], [0, 0, 1, 1], [], []>} : vector<16x32xf32>, vector<32x4xf32>, vector<16x4xf32> -> vector<16x4xf32>
    %18 = vector.broadcast %15 : vector<1x4xf32> to vector<16x4xf32>
    %19 = arith.addf %17, %18 : vector<16x4xf32>
    %cst_18 = arith.constant dense<0.000000e+00> : vector<16x32xf32>
    %20 = tpu.matmul %16, %13, %cst_18 {dimension_numbers = #tpu.dot_dimension_numbers<[1], [0], [0], [1], [0, 0, 1, 1], [], []>} : vector<16x32xf32>, vector<32x32xf32>, vector<16x32xf32> -> vector<16x32xf32>
    %21 = arith.addf %12, %20 : vector<16x32xf32>
    %22 = math.tanh %21 : vector<16x32xf32>
    %cst_19 = arith.constant dense<0.000000e+00> : vector<16x4xf32>
    %23 = tpu.matmul %22, %14, %cst_19 {dimension_numbers = #tpu.dot_dimension_numbers<[1], [0], [0], [1], [0, 0, 1, 1], [], []>} : vector<16x32xf32>, vector<32x4xf32>, vector<16x4xf32> -> vector<16x4xf32>
    %24 = vector.broadcast %15 : vector<1x4xf32> to vector<16x4xf32>
    %25 = arith.addf %23, %24 : vector<16x4xf32>
    %cst_20 = arith.constant dense<0.000000e+00> : vector<16x32xf32>
    %26 = tpu.matmul %22, %13, %cst_20 {dimension_numbers = #tpu.dot_dimension_numbers<[1], [0], [0], [1], [0, 0, 1, 1], [], []>} : vector<16x32xf32>, vector<32x32xf32>, vector<16x32xf32> -> vector<16x32xf32>
    %27 = arith.addf %12, %26 : vector<16x32xf32>
    %28 = math.tanh %27 : vector<16x32xf32>
    %cst_21 = arith.constant dense<0.000000e+00> : vector<16x4xf32>
    %29 = tpu.matmul %28, %14, %cst_21 {dimension_numbers = #tpu.dot_dimension_numbers<[1], [0], [0], [1], [0, 0, 1, 1], [], []>} : vector<16x32xf32>, vector<32x4xf32>, vector<16x4xf32> -> vector<16x4xf32>
    %30 = vector.broadcast %15 : vector<1x4xf32> to vector<16x4xf32>
    %31 = arith.addf %29, %30 : vector<16x4xf32>
    %32 = tpu.concatenate %19, %25, %31 in 1 : vector<16x4xf32>, vector<16x4xf32>, vector<16x4xf32> -> vector<16x12xf32>
    %c0_22 = arith.constant 0 : index
    %c0_23 = arith.constant 0 : index
    %33 = vector.load %arg9[%c0_22, %c0_23] : memref<16x12xf32, #tpu.memory_space<vmem>>, vector<16x12xf32>
    tpu.vector_store %arg9[%c0_22, %c0_23], %32 {strides = array<i32>} : memref<16x12xf32, #tpu.memory_space<vmem>>, vector<16x12xf32>,
    return
  }
  func.func @transform_0(%arg0: i32) -> (i32, i32) {
    %c0_i32 = arith.constant 0 : i32
    %c0_i32_0 = arith.constant 0 : i32
    return %arg0, %c0_i32 : i32, i32
  }
  func.func @transform_1(%arg0: i32) -> (i32, i32) {
    %c0_i32 = arith.constant 0 : i32
    %c0_i32_0 = arith.constant 0 : i32
    %c0_i32_1 = arith.constant 0 : i32
    return %c0_i32, %c0_i32_0 : i32, i32
  }
  func.func @transform_2(%arg0: i32) -> (i32, i32) {
    %c0_i32 = arith.constant 0 : i32
    %c0_i32_0 = arith.constant 0 : i32
    %c0_i32_1 = arith.constant 0 : i32
    return %c0_i32, %c0_i32_0 : i32, i32
  }
  func.func @transform_3(%arg0: i32) -> (i32, i32) {
    %c0_i32 = arith.constant 0 : i32
    %c0_i32_0 = arith.constant 0 : i32
    %c0_i32_1 = arith.constant 0 : i32
    return %c0_i32, %c0_i32_0 : i32, i32
  }
  func.func @transform_4(%arg0: i32) -> (i32, i32) {
    %c0_i32 = arith.constant 0 : i32
    %c0_i32_0 = arith.constant 0 : i32
    %c0_i32_1 = arith.constant 0 : i32
    return %c0_i32, %c0_i32_0 : i32, i32
  }
  func.func @transform_5(%arg0: i32) -> (i32, i32) {
    %c0_i32 = arith.constant 0 : i32
    %c0_i32_0 = arith.constant 0 : i32
    %c0_i32_1 = arith.constant 0 : i32
    return %c0_i32, %c0_i32_0 : i32, i32
  }
  func.func @transform_6(%arg0: i32) -> (i32, i32) {
    %c0_i32 = arith.constant 0 : i32
    %c0_i32_0 = arith.constant 0 : i32
    %c0_i32_1 = arith.constant 0 : i32
    return %c0_i32, %c0_i32_0 : i32, i32
  }
  func.func @transform_7(%arg0: i32) -> (i32, i32) {
    %c0_i32 = arith.constant 0 : i32
    %c0_i32_0 = arith.constant 0 : i32
    %c0_i32_1 = arith.constant 0 : i32
    return %c0_i32, %c0_i32_0 : i32, i32
  }
  func.func @transform_8(%arg0: i32) -> (i32, i32) {
    %c0_i32 = arith.constant 0 : i32
    %c0_i32_0 = arith.constant 0 : i32
    return %arg0, %c0_i32 : i32, i32
  }
}

</mosaic_0001>

<bundles_post_ra>
// kernel: tpu_custom_call.1
= control target key start
LH: loop header
LB: loop body
LE: loop exit
PB: predicated region body
PF: predicated region fallthrough
CT: control target
= control target key end

     0   :  { %s1206_s0 = inlined_call_operand.vmem [shape: f32[16,256], index: 0, kind: input, shape index: {}]   ;;  %s1207_s1 = inlined_call_operand.vmem [shape: f32[256,32], index: 1, kind: input, shape index: {}]   ;;  %s1208_s2 = inlined_call_operand.vmem [shape: f32[1,32], index: 2, kind: input, shape index: {}]   ;;  %s1209_s3 = inlined_call_operand.vmem [shape: f32[32,32], index: 3, kind: input, shape index: {}]   ;;  %s1210_s4 = inlined_call_operand.vmem [shape: f32[32,32], index: 4, kind: input, shape index: {}]   ;;  %s1211_s5 = inlined_call_operand.vmem [shape: f32[1,32], index: 5, kind: input, shape index: {}]   ;;  %s1212_s6 = inlined_call_operand.vmem [shape: f32[32,4], index: 6, kind: input, shape index: {}]   ;;  %s1213_s7 = inlined_call_operand.vmem [shape: f32[1,4], index: 7, kind: input, shape index: {}]   ;;  %s1214_s8 = inlined_call_operand.hbm [shape: f32[16,12], index: 8, kind: output, shape index: {}]  }
   0x1   :  { %v50_v0 = vld [vmem:[%s1207_s1 + $0x80] sm:$0xff]  ;;  %v51_v1 = vld [vmem:[%s1207_s1 + $0x88] sm:$0xff]  ;;  %v52_v5 = vld [vmem:[%s1207_s1 + $0x90] sm:$0xff] }
   0x2   :  { %v34_v2 = vld [vmem:[%s1207_s1] sm:$0xff]  ;;  %v857_v3 = vpack.c.bf16 %v51_v1, %v50_v0  ;;  %v35_v4 = vld [vmem:[%s1207_s1 + $0x8] sm:$0xff]  ;;  %v53_v6 = vld [vmem:[%s1207_s1 + $0x98] sm:$0xff] }
   0x3   :  { %v859_v7 = vpack.c.bf16 %v35_v4, %v34_v2  ;;  %v861_v8 = vpack.c.bf16 %v53_v6, %v52_v5  ;;  %v36_v9 = vld [vmem:[%s1207_s1 + $0x10] sm:$0xff]  ;;  %v37_v10 = vld [vmem:[%s1207_s1 + $0x18] sm:$0xff]  ;;  %v54_v11 = vld [vmem:[%s1207_s1 + $0xa0] sm:$0xff] }
   0x4   :  { %858 = vmatprep.subr.bf16.mxu0 %v857_v3  ;;  %v55_v12 = vld [vmem:[%s1207_s1 + $0xa8] sm:$0xff]  ;;  %v863_v13 = vpack.c.bf16 %v37_v10, %v36_v9  ;;  %v38_v15 = vld [vmem:[%s1207_s1 + $0x20] sm:$0xff]  ;;  %v56_v17 = vld [vmem:[%s1207_s1 + $0xb0] sm:$0xff] }
   0x5   :  { %860 = vmatpush3.bf16.msra.mxu0 %v859_v7  ;;  %v865_v14 = vpack.c.bf16 %v55_v12, %v54_v11  ;;  %v39_v16 = vld [vmem:[%s1207_s1 + $0x28] sm:$0xff]  ;;  %v57_v18 = vld [vmem:[%s1207_s1 + $0xb8] sm:$0xff]  ;;  %v40_v21 = vld [vmem:[%s1207_s1 + $0x30] sm:$0xff] }
   0x6   :  { %862 = vmatprep.subr.bf16.mxu0 %v861_v8  ;;  %v867_v19 = vpack.c.bf16 %v39_v16, %v38_v15  ;;  %v869_v20 = vpack.c.bf16 %v57_v18, %v56_v17  ;;  %v41_v22 = vld [vmem:[%s1207_s1 + $0x38] sm:$0xff]  ;;  %v58_v23 = vld [vmem:[%s1207_s1 + $0xc0] sm:$0xff]  ;;  %v59_v24 = vld [vmem:[%s1207_s1 + $0xc8] sm:$0xff] }
   0x7   :  { %v31_v25 = vld [vmem:[%s1206_s0 + $0x8] sm:$0xff]  ;;  %v871_v26 = vpack.c.bf16 %v41_v22, %v40_v21 }
   0x8   :  { %137 = vmatprep.mubr.f32.mxu0 %v31_v25 }
   0x9   :  { %864 = vmatpush3.bf16.msra.mxu0 %v863_v13 }
   0xa   :  { %866 = vmatprep.subr.bf16.mxu0 %v865_v14 }
   0xd   :  { %868 = vmatpush3.bf16.msra.mxu0 %v867_v19 }
   0xe   :  { %13 = vsyncpa [#allocation3], 0  ;;  %870 = vmatprep.subr.bf16.mxu0 %v869_v20  ;;  %v873_v27 = vpack.c.bf16 %v59_v24, %v58_v23  ;;  %v42_v28 = vld [vmem:[%s1207_s1 + $0x40] sm:$0xff]  ;;  %v43_v29 = vld [vmem:[%s1207_s1 + $0x48] sm:$0xff]  ;;  %vm161_vm0 = vcmask 261120   ;;  %s977_s11 = smov 4  }
   0xf   :  { %v60_v30 = vld [vmem:[%s1207_s1 + $0xd0] sm:$0xff]  ;;  %v61_v31 = vld [vmem:[%s1207_s1 + $0xd8] sm:$0xff]  ;;  %v875_v32 = vpack.c.bf16 %v43_v29, %v42_v28  ;;  %v62_v36 = vld [vmem:[%s1207_s1 + $0xe0] sm:$0xff]  ;;  %vm677_vm1 = vcmask 31744   ;;  %vm680_vm2 = vcmask 64512   ;;  %vm683_vm3 = vcmask 97280  }
  0x10   :  { %v877_v33 = vpack.c.bf16 %v61_v31, %v60_v30  ;;  %v44_v34 = vld [vmem:[%s1207_s1 + $0x50] sm:$0xff]  ;;  %v45_v35 = vld [vmem:[%s1207_s1 + $0x58] sm:$0xff]  ;;  %v63_v37 = vld [vmem:[%s1207_s1 + $0xe8] sm:$0xff]  ;;  %s979_s12 = smov [#allocation2]  }
  0x11   :  { %872 = vmatpush3.bf16.msra.mxu0 %v871_v26  ;;  %v879_v38 = vpack.c.bf16 %v45_v35, %v44_v34  ;;  %v881_v39 = vpack.c.bf16 %v63_v37, %v62_v36  ;;  %v46_v40 = vld [vmem:[%s1207_s1 + $0x60] sm:$0xff]  ;;  %v47_v41 = vld [vmem:[%s1207_s1 + $0x68] sm:$0xff]  ;;  %v64_v42 = vld [vmem:[%s1207_s1 + $0xf0] sm:$0xff]  ;;  %s691_s13 = sshll.u32 %s979_s12, 4  ;;  %s692_s13 = int_to_ptr.vmem [resolvable:$true] %s691_s13 }
  0x12   :  { %874 = vmatprep.subr.bf16.mxu0 %v873_v27  ;;  %v65_v43 = vld [vmem:[%s1207_s1 + $0xf8] sm:$0xff]  ;;  %v883_v44 = vpack.c.bf16 %v47_v41, %v46_v40  ;;  %v48_v46 = vld [vmem:[%s1207_s1 + $0x70] sm:$0xff]  ;;  %v30_v49 = vld [vmem:[%s1206_s0] sm:$0xff]  ;;  %s953_s14 = scalar_lea.vmem %s692_s13, 256  ;;  %p958_p1 = scmp.lt.s32.totalorder %s692_s13, %s692_s13 }
  0x13   :  { %v885_v45 = vpack.c.bf16 %v65_v43, %v64_v42  ;;  %v49_v47 = vld [vmem:[%s1207_s1 + $0x78] sm:$0xff]  ;;  %v32_v51 = vld [vmem:[%s1206_s0 + $0x10] sm:$0xff]  ;;  %v150_v52 = vld [vmem:[%s1209_s3] sm:$0xff]  ;;  %p954_p0 = scmp.ne.s32.totalorder %s692_s13, %s953_s14  ;;  %p959_p2 = scmp.lt.s32.totalorder %s953_s14, %s953_s14 }
  0x14   :  { %v887_v48 = vpack.c.bf16 %v49_v47, %v48_v46  ;;  %v33_v50 = vld [vmem:[%s1206_s0 + $0x18] sm:$0xff]  ;;  %v151_v53 = vld [vmem:[%s1209_s3 + $0x8] sm:$0xff]  ;;  %v152_v55 = vld [vmem:[%s1209_s3 + $0x10] sm:$0xff] }
  0x15   :  { %876 = vmatpush3.bf16.msra.mxu0 %v875_v32  ;;  %v889_v54 = vpack.c.bf16 %v151_v53, %v150_v52  ;;  %v153_v56 = vld [vmem:[%s1209_s3 + $0x18] sm:$0xff]  ;;  %v702_v60 = vld [vmem:[%s1208_s2] ss:$0 sm:$0xff]  ;;  %v248_v6 = vld [vmem:[%s1212_s6 + $0x8] sm:$0xff]  ;;  %p960_p3 = por %p959_p2, %p958_p1 }
  0x16   :  { %878 = vmatprep.subr.bf16.mxu0 %v877_v33  ;;  %v893_v57 = vpack.c.bf16 %v153_v56, %v152_v55  ;;  %v247_v5 = vld [vmem:[%s1212_s6] sm:$0xff]  ;;  %v249_v7 = vld [vmem:[%s1212_s6 + $0x10] sm:$0xff]  ;;  %v250_v9 = vld [vmem:[%s1212_s6 + $0x18] sm:$0xff] }
  0x17   :  { %890 = vmatprep.subr.bf16.mxu1 %v889_v54  ;;  %v897_v8 = vpack.c.bf16 %v248_v6, %v247_v5  ;;  %v901_v10 = vpack.c.bf16 %v250_v9, %v249_v7  ;;  %v243_v11 = vld [vmem:[%s1210_s4] sm:$0xff]  ;;  %v244_v12 = vld [vmem:[%s1210_s4 + $0x8] sm:$0xff]  ;;  %v245_v14 = vld [vmem:[%s1210_s4 + $0x10] sm:$0xff]  ;;  %p961_p4 = pnand %p960_p3, %p954_p0 }
  0x18   :  { %892 = vmatpush3.bf16.msra.mxu1 %v889_v54  ;;  %v905_v13 = vpack.c.bf16 %v244_v12, %v243_v11  ;;  %v246_v15 = vld [vmem:[%s1210_s4 + $0x18] sm:$0xff]  ;;  %v703_v17 = vld [vmem:[%s1211_s5] ss:$0 sm:$0xff] }
  0x19   :  { %880 = vmatpush3.bf16.msra.mxu0 %v879_v38  ;;  %894 = vmatprep.subr.bf16.mxu1 %v893_v57  ;;  %v909_v16 = vpack.c.bf16 %v246_v15, %v245_v14  ;;  %v706_v34 = vld [vmem:[%s1213_s7] ss:$0 sm:$0xff]  ;;  %s978_s7 = smov 8  }
  0x1a   :  { %882 = vmatprep.subr.bf16.mxu0 %v881_v39 }
  0x1c   :  { %896 = vmatpush3.bf16.msra.mxu1 %v893_v57 }
  0x1d   :  { %884 = vmatpush3.bf16.msra.mxu0 %v883_v44  ;;  %898 = vmatprep.subr.bf16.mxu1 %v897_v8 }
  0x1e   :  { %886 = vmatprep.subr.bf16.mxu0 %v885_v45 }
  0x21   :  { %888 = vmatpush3.bf16.msra.mxu0 %v887_v48 }
  0x22   :  { %922 = vmatprep.subr.bf16.mxu0 %v905_v13 }
  0x24   :  { %138 = vmatmul.mubr.f32.vlgmr.msra.gmra.mrb[0].mxu0 %v30_v49 }
  0x25   :  { %142 = vmatprep.mubr.f32.mxu0 %v33_v50  ;;  %924 = vmatpush3.bf16.msra.mxu0 %v905_v13 }
  0x26   :  { %926 = vmatprep.subr.bf16.mxu0 %v909_v16 }
  0x28   :  { %143 = vmatmul.mubr.f32.gmra.mrb[2].mxu0 %v32_v51 }
  0x29   :  { %928 = vmatpush3.bf16.msra.mxu0 %v909_v16 }
  0xf7   :  { %v749_v58 = vpop.f32.mrb[0].mxu0 }
  0xf8   :  { %v750_v59 = vpop.f32.mrb[1].mxu0 }
  0xf9   :  { %v751_v61 = vadd.f32 %v750_v59, %v749_v58 }
  0xfb   :  { %v752_v62 = vpop.f32.mrb[2].mxu0  ;;  %v140_v63 = vadd.f32 %v751_v61, %v702_v60 }
  0xfc   :  { %v753_v0 = vpop.f32.mrb[3].mxu0 }
  0xfd   :  { %v754_v1 = vadd.f32 %v753_v0, %v752_v62  ;;  %v148_v2 = vmax.f32 %v140_v63, 0.0 }
  0xff   :  { %v145_v3 = vadd.f32 %v754_v1, %v702_v60  ;;  %799 = vmatprep.mubr.msk.f32.mxu1 %vm161_vm0, %v148_v2 }
 0x101   :  { %v149_v4 = vmax.f32 %v145_v3, 0.0 }
 0x103   :  { %800 = vmatmul.mubr.msk.f32.vlgmr.msra.gmra.mrb[0].mxu1 %vm161_vm0, %v149_v4 }
 0x104   :  { %900 = vmatpush3.bf16.msra.mxu1 %v897_v8 }
 0x105   :  { %902 = vmatprep.subr.bf16.mxu1 %v901_v10 }
 0x108   :  { %904 = vmatpush3.bf16.msra.mxu1 %v901_v10 }
 0x109   :  { %906 = vmatprep.subr.bf16.mxu1 %v905_v13 }
 0x1d6   :  { %v801_v18 = vpop.f32.mrb[0].mxu1 }
 0x1d7   :  { %v240_v19 = vadd.f32 %v801_v18, %v703_v17  ;;  %v234_v20 = vpop.f32.mrb[1].mxu1 }
 0x1d8   :  { %v235_v21 = vadd.f32 %v703_v17, %v234_v20 }
 0x1da   :  { %941 = vtanh.f32 %v235_v21 }
 0x1db   :  { %943 = vtanh.f32 %v240_v19 }
 0x1e4   :  { %v942_v22 = vpop.eup %941 }
 0x1e5   :  { %v944_v23 = vpop.eup %943  ;;  %810 = vmatprep.mubr.msk.f32.mxu1 %vm161_vm0, %v942_v22 }
 0x1e6   :  { %811 = vmatmul.mubr.msk.f32.vlgmr.msra.gmra.mrb[2].mxu1 %vm161_vm0, %v944_v23 }
 0x1e7   :  { %908 = vmatpush3.bf16.msra.mxu1 %v905_v13  ;;  %821 = vmatprep.mubr.msk.f32.mxu1 %vm161_vm0, %v942_v22 }
 0x1e8   :  { %910 = vmatprep.subr.bf16.mxu1 %v909_v16 }
 0x1eb   :  { %912 = vmatpush3.bf16.msra.mxu1 %v909_v16 }
 0x1ec   :  { %914 = vmatprep.subr.bf16.mxu1 %v897_v8 }
 0x1ee   :  { %822 = vmatmul.mubr.msk.f32.vlgmr.msra.gmra.mrb[4].mxu1 %vm161_vm0, %v944_v23 }
 0x1ef   :  { %916 = vmatpush3.bf16.msra.mxu1 %v897_v8 }
 0x1f0   :  { %918 = vmatprep.subr.bf16.mxu1 %v901_v10 }
 0x1f3   :  { %920 = vmatpush3.bf16.msra.mxu1 %v901_v10 }
 0x1f4   :  { %930 = vmatprep.subr.bf16.mxu1 %v897_v8 }
 0x2b9   :  { %v812_v24 = vpop.f32.mrb[2].mxu1 }
 0x2ba   :  { %v332_v25 = vpop.f32.mrb[3].mxu1  ;;  %v338_v53 = vadd.f32 %v812_v24, %v706_v34 }
 0x2bb   :  { %v333_v48 = vadd.f32 %v706_v34, %v332_v25 }
 0x2c1   :  { %v823_v26 = vpop.f32.mrb[4].mxu1 }
 0x2c2   :  { %v417_v27 = vadd.f32 %v823_v26, %v240_v19  ;;  %v407_v28 = vpop.f32.mrb[5].mxu1 }
 0x2c3   :  { %v416_v29 = vadd.f32 %v407_v28, %v235_v21 }
 0x2c5   :  { %945 = vtanh.f32 %v416_v29 }
 0x2c6   :  { %947 = vtanh.f32 %v417_v27 }
 0x2cf   :  { %v946_v30 = vpop.eup %945 }
 0x2d0   :  { %v948_v31 = vpop.eup %947  ;;  %832 = vmatprep.mubr.msk.f32.mxu1 %vm161_vm0, %v946_v30  ;;  %843 = vmatprep.mubr.msk.f32.mxu0 %vm161_vm0, %v946_v30 }
 0x2d1   :  { %833 = vmatmul.mubr.msk.f32.vlgmr.msra.gmra.mrb[6].mxu1 %vm161_vm0, %v948_v31  ;;  %844 = vmatmul.mubr.msk.f32.vlgmr.msra.gmra.mrb[4].mxu0 %vm161_vm0, %v948_v31 }
 0x2d2   :  { %932 = vmatpush3.bf16.msra.mxu1 %v897_v8 }
 0x2d3   :  { %934 = vmatprep.subr.bf16.mxu1 %v901_v10 }
 0x2d6   :  { %936 = vmatpush3.bf16.msra.mxu1 %v901_v10 }
 0x3a4   :  { %v834_v32 = vpop.f32.mrb[6].mxu1  ;;  %v845_v33 = vpop.f32.mrb[4].mxu0 }
 0x3a5   :  { %v577_v35 = vadd.f32 %v845_v33, %v240_v19  ;;  %v492_v36 = vpop.f32.mrb[7].mxu1  ;;  %v567_v37 = vpop.f32.mrb[5].mxu0  ;;  %v498_v40 = vadd.f32 %v834_v32, %v706_v34 }
 0x3a6   :  { %v493_v38 = vadd.f32 %v706_v34, %v492_v36  ;;  %v576_v39 = vadd.f32 %v567_v37, %v235_v21 }
 0x3a8   :  { %949 = vtanh.f32 %v576_v39  ;;  %663 = vrot.lane.b32.xlu0 %v493_v38, %s977_s11 }
 0x3a9   :  { %951 = vtanh.f32 %v577_v35 }
 0x3ac   :  { %665 = vrot.lane.b32.xlu0 %v498_v40, %s977_s11 }
 0x3b2   :  { %v950_v41 = vpop.eup %949 }
 0x3b3   :  { %v952_v42 = vpop.eup %951  ;;  %854 = vmatprep.mubr.msk.f32.mxu1 %vm161_vm0, %v950_v41 }
 0x3b4   :  { %855 = vmatmul.mubr.msk.f32.vlgmr.msra.gmra.mrb[8].mxu1 %vm161_vm0, %v952_v42 }
 0x41a   :  { %v664_v47 = vpop.permute.xlu0 %663 }
 0x41b   :  { %v678_v49 = vsel %vm677_vm1, %v333_v48, %v664_v47 }
 0x41e   :  { %v666_v51 = vpop.permute.xlu0 %665 }
 0x41f   :  { %v679_v54 = vsel %vm677_vm1, %v338_v53, %v666_v51 }
 0x487   :  { %v856_v43 = vpop.f32.mrb[8].mxu1 }
 0x488   :  { %v652_v44 = vpop.f32.mrb[9].mxu1  ;;  %v658_v46 = vadd.f32 %v856_v43, %v706_v34 }
 0x489   :  { %v653_v45 = vadd.f32 %v706_v34, %v652_v44 }
 0x48b   :  { %671 = vrot.lane.b32.xlu1 %v653_v45, %s978_s7 }
 0x48f   :  { %673 = vrot.lane.b32.xlu1 %v658_v46, %s978_s7 }
 0x4fd   :  { %v672_v50 = vpop.permute.xlu1 %671 }
 0x4fe   :  { %v681_v52 = vsel %vm680_vm2, %v678_v49, %v672_v50 }
 0x4ff   :  { %684 = vst.msk [vmem:[#allocation2] sm:$0xff] %vm683_vm3, %v681_v52 }
 0x501   :  { %v674_v55 = vpop.permute.xlu1 %673 }
 0x502   :  { %v682_v56 = vsel %vm680_vm2, %v679_v54, %v674_v55 }
 0x503   :  { %685 = vst.msk [vmem:[#allocation2 + $0x8] sm:$0xff] %vm683_vm3, %v682_v56 }
 0x504   :  { %964 = shalt.err (!%p961_p4)
}
 0x505   :  { %s965_s17 = scalar_lea.hbm %s1214_s8, 256 }
 0x506   :  { %p966_p5 = scmp.ne.s32.totalorder %s1214_s8, %s965_s17  ;;  %p969_p6 = scmp.lt.u32.totalorder %s965_s17, %s1214_s8 }
 0x508   :  { %p971_p7 = pnand %p969_p6, %p966_p5 }
 0x50a   :  { %974 = shalt.err (!%p971_p7)
}
 0x50b   :  { %s980_s20 = smov 128  }
 0x50c   :  { %697 = dma.vmem_to_hbm [thread:$0]  %s692_s13, 256, %s1214_s8, [#allocation3], %s980_s20, %s980_s20, %s978_s7  }
 0x50d   :  { %975 = dma.done.wait [#allocation3], 256  }
 0x50e   :  { %976 = vsyncadd [#allocation3], 4294967040 }
 0x50f   :  { %701 = vsyncpa [#allocation3], 1 }

</bundles_post_ra>
